<compile_context>
chip_gen: v5e
topology: v5e:2x2
jax: 0.10.0
libtpu: 0.0.40
codegen_flags: <defaults>
</compile_context>

<pallas_src>
import jax
import jax.numpy as jnp
from jax.experimental import pallas as pl
from jax.experimental.pallas import tpu as pltpu

HID = 128          # hidden_dim hard-coded in ConvActor
FEAT_P = 7         # concatenated positions per channel (3 + 3 + 1)
OUT_DIM = 18       # 3 * 3 * 2
OUT_PAD = 128      # final layer padded to a full lane width for a dense store


def _conv_actor_kernel(state_s, a_s,
                       w1t_ref, b1_ref, w2t_ref, b2_ref, w3t_ref, b3_ref,
                       w1m_ref, lb1_ref, w2m_ref, lb2_ref, w3m_ref, lb3_ref,
                       w4m_ref, lb4_ref, out_ref):
    def relu(v):
        return jnp.maximum(v, 0.0)

    def prelu(v, a):
        return jnp.maximum(v, 0.0) + a * jnp.minimum(v, 0.0)

    # ---- three ConvNets (Conv -> Dropout(eval) -> ReLU), im2col fused ----
    # Each output position = sum of <=9 (SMEM scalar tap) * (VMEM weight row)
    # VPU madds in f32.  feat[p] is row p of the (7, HID) feature map F[p, c].
    feat = []
    for h in range(3):                       # conv1, kernel (1,3): taps state[h, k]
        acc = b1_ref[...]
        for k in range(3):
            acc = acc + state_s[h, k] * w1t_ref[k:k + 1, :]
        feat.append(relu(acc))
    for j in range(3):                       # conv2, kernel (3,1), then swapaxes(1,2)
        acc = b2_ref[...]
        for k in range(3):
            acc = acc + state_s[k, j] * w2t_ref[k:k + 1, :]
        feat.append(relu(acc))
    acc = b3_ref[...]                        # conv3, kernel (3,3)
    for i in range(3):
        for j in range(3):
            t = 3 * i + j
            acc = acc + state_s[i, j] * w3t_ref[t:t + 1, :]
    feat.append(relu(acc))

    # ---- MLP layer 1: torch's channel-major flatten (c*7 + p) is folded
    # into w1m[p] (done once in the wrapper), so this is just 7 dense
    # (1,HID) x (HID,HID) MXU matmuls accumulated in f32.
    h1 = lb1_ref[...]
    for p in range(FEAT_P):
        h1 = h1 + jnp.dot(feat[p], w1m_ref[p],
                          preferred_element_type=jnp.float32)
    h1 = prelu(h1, a_s[0])

    h2 = prelu(jnp.dot(h1, w2m_ref[...],
                       preferred_element_type=jnp.float32) + lb2_ref[...],
               a_s[1])
    h3 = prelu(jnp.dot(h2, w3m_ref[...],
                       preferred_element_type=jnp.float32) + lb3_ref[...],
               a_s[2])

    out = jnp.dot(h3, w4m_ref[...],
                  preferred_element_type=jnp.float32) + lb4_ref[...]
    out_ref[...] = out.astype(out_ref.dtype)   # lane-dense (1, 128) store


def prepare_params(p):
    """One-time weight relayout (plain JAX, outside the kernel)."""
    w1t = p["c1_w"].reshape(HID, 3).T                       # (3, HID)
    w2t = p["c2_w"].reshape(HID, 3).T                       # (3, HID)
    w3t = p["c3_w"].reshape(HID, 9).T                       # (9, HID)
    b1 = p["c1_b"].reshape(1, HID)
    b2 = p["c2_b"].reshape(1, HID)
    b3 = p["c3_b"].reshape(1, HID)
    # First Linear: fold torch's channel-major flatten (index = c*7 + p).
    w1m = jnp.transpose(p["l1_w"].reshape(HID, HID, FEAT_P), (2, 1, 0))  # (7,HID,HID)
    lb1 = p["l1_b"].reshape(1, HID)
    w2m = p["l2_w"].T
    lb2 = p["l2_b"].reshape(1, HID)
    w3m = p["l3_w"].T
    lb3 = p["l3_b"].reshape(1, HID)
    # Last Linear padded to 128 lanes -> dense store; sliced after the call.
    w4m = jnp.zeros((HID, OUT_PAD), jnp.float32).at[:, :OUT_DIM].set(p["l4_w"].T)
    lb4 = jnp.zeros((1, OUT_PAD), jnp.float32).at[0, :OUT_DIM].set(p["l4_b"])
    prelu_a = jnp.stack([p["a1"], p["a2"], p["a3"]]).astype(jnp.float32)  # (3,)
    return (w1t, b1, w2t, b2, w3t, b3, w1m, lb1, w2m, lb2, w3m, lb3,
            w4m, lb4, prelu_a)


@jax.jit
def conv_actor_forward(state, prepped):
    """state: (1, 3, 3) float32 (C=1, H=3, W=3, unbatched like the PyTorch module)."""
    (w1t, b1, w2t, b2, w3t, b3, w1m, lb1, w2m, lb2, w3m, lb3,
     w4m, lb4, prelu_a) = prepped
    state2d = state.reshape(3, 3)

    smem = lambda: pl.BlockSpec(memory_space=pltpu.MemorySpace.SMEM)
    vmem = lambda: pl.BlockSpec(memory_space=pltpu.MemorySpace.VMEM)

    out = pl.pallas_call(
        _conv_actor_kernel,
        out_shape=jax.ShapeDtypeStruct((1, OUT_PAD), jnp.float32),
        in_specs=[smem(), smem()] + [vmem() for _ in range(14)],
        out_specs=vmem(),
    )(state2d, prelu_a,
      w1t, b1, w2t, b2, w3t, b3,
      w1m, lb1, w2m, lb2, w3m, lb3, w4m, lb4)

    return out[0, :OUT_DIM]


def init_params(key):
    """Deterministic params matching the module's shapes / init style."""
    ks = jax.random.split(key, 10)

    def conv_init(kw, kb, shape):
        fan_in = shape[1] * shape[2] * shape[3]
        bound = 1.0 / (fan_in ** 0.5)
        w = jax.random.uniform(kw, shape, minval=-bound, maxval=bound,
                               dtype=jnp.float32)
        b = jax.random.uniform(kb, (shape[0],), minval=-bound, maxval=bound,
                               dtype=jnp.float32)
        return w, b

    def xavier_linear(kw, out_dim, in_dim):
        std = (2.0 / (in_dim + out_dim)) ** 0.5
        w = std * jax.random.normal(kw, (out_dim, in_dim), dtype=jnp.float32)
        b = jnp.zeros((out_dim,), jnp.float32)   # init_weights: bias.fill_(0)
        return w, b

    c1_w, c1_b = conv_init(ks[0], ks[1], (HID, 1, 1, 3))
    c2_w, c2_b = conv_init(ks[2], ks[3], (HID, 1, 3, 1))
    c3_w, c3_b = conv_init(ks[4], ks[5], (HID, 1, 3, 3))
    l1_w, l1_b = xavier_linear(ks[6], HID, FEAT_P * HID)
    l2_w, l2_b = xavier_linear(ks[7], HID, HID)
    l3_w, l3_b = xavier_linear(ks[8], HID, HID)
    l4_w, l4_b = xavier_linear(ks[9], OUT_DIM, HID)
    a = jnp.array(0.25, jnp.float32)             # nn.PReLU() default
    return dict(c1_w=c1_w, c1_b=c1_b, c2_w=c2_w, c2_b=c2_b,
                c3_w=c3_w, c3_b=c3_b,
                l1_w=l1_w, l1_b=l1_b, l2_w=l2_w, l2_b=l2_b,
                l3_w=l3_w, l3_b=l3_b, l4_w=l4_w, l4_b=l4_b,
                a1=a, a2=a, a3=a)


def reference_forward(state, p):
    """Pure-JAX re-implementation of ConvActor.forward (eval mode)."""
    hi = jax.lax.Precision.HIGHEST
    x = state[None]                                  # (1, 1, 3, 3)

    def convnet(w, b):
        y = jax.lax.conv_general_dilated(
            x, w, window_strides=(1, 1), padding="VALID",
            dimension_numbers=("NCHW", "OIHW", "NCHW"), precision=hi)
        return jnp.maximum(y + b[None, :, None, None], 0.0)[0]   # (C, H', W')

    o1 = convnet(p["c1_w"], p["c1_b"])               # (128, 3, 1)
    o2 = convnet(p["c2_w"], p["c2_b"])               # (128, 1, 3)
    o3 = convnet(p["c3_w"], p["c3_b"])               # (128, 1, 1)
    o2 = jnp.swapaxes(o2, 1, 2)                      # (128, 3, 1)
    feat = jnp.concatenate([o1, o2, o3], axis=1).reshape(-1)     # (896,)

    def prelu(v, a):
        return jnp.maximum(v, 0.0) + a * jnp.minimum(v, 0.0)

    h = prelu(jnp.dot(p["l1_w"], feat, precision=hi) + p["l1_b"], p["a1"])
    h = prelu(jnp.dot(p["l2_w"], h, precision=hi) + p["l2_b"], p["a2"])
    h = prelu(jnp.dot(p["l3_w"], h, precision=hi) + p["l3_b"], p["a3"])
    return jnp.dot(p["l4_w"], h, precision=hi) + p["l4_b"]       # (18,)


if __name__ == "__main__":
    key = jax.random.PRNGKey(0)
    k_state, k_params = jax.random.split(key)

    # ConvActor's MLP (input_dim = 7 * hidden_dim) only closes for a 1x3x3
    # state (tic-tac-toe board), so that is the shape the forward implies.
    state = jax.random.normal(k_state, (1, 3, 3), dtype=jnp.float32)
    params = init_params(k_params)
    prepped = prepare_params(params)

    out = conv_actor_forward(state, prepped)
    out = jax.block_until_ready(out)

    ref = reference_forward(state, params)
    assert out.shape == (OUT_DIM,), out.shape
    assert jnp.allclose(out, ref, atol=2e-2, rtol=2e-2), \
        float(jnp.max(jnp.abs(out - ref)))

    print("KERNEL_OK")
</pallas_src>

<mosaic_0001>
module attributes {stable_mosaic.version = 11 : i64} {
  func.func @_conv_actor_kernel(%arg0: memref<3x3xf32, #tpu.memory_space<smem>>, %arg1: memref<3xf32, #tpu.memory_space<smem>>, %arg2: memref<3x128xf32, #tpu.memory_space<vmem>>, %arg3: memref<1x128xf32, #tpu.memory_space<vmem>>, %arg4: memref<3x128xf32, #tpu.memory_space<vmem>>, %arg5: memref<1x128xf32, #tpu.memory_space<vmem>>, %arg6: memref<9x128xf32, #tpu.memory_space<vmem>>, %arg7: memref<1x128xf32, #tpu.memory_space<vmem>>, %arg8: memref<7x128x128xf32, #tpu.memory_space<vmem>>, %arg9: memref<1x128xf32, #tpu.memory_space<vmem>>, %arg10: memref<128x128xf32, #tpu.memory_space<vmem>>, %arg11: memref<1x128xf32, #tpu.memory_space<vmem>>, %arg12: memref<128x128xf32, #tpu.memory_space<vmem>>, %arg13: memref<1x128xf32, #tpu.memory_space<vmem>>, %arg14: memref<128x128xf32, #tpu.memory_space<vmem>>, %arg15: memref<1x128xf32, #tpu.memory_space<vmem>>, %arg16: memref<1x128xf32, #tpu.memory_space<vmem>>) attributes {dimension_semantics = [], scalar_prefetch = 0 : i64, scratch_operands = 0 : i64, tpu.core_type = #tpu.core_type<tc>} {
    %c0 = arith.constant 0 : index
    %c0_0 = arith.constant 0 : index
    %0 = vector.load %arg3[%c0, %c0_0] : memref<1x128xf32, #tpu.memory_space<vmem>>, vector<1x128xf32>
    %c0_1 = arith.constant 0 : index
    %c0_2 = arith.constant 0 : index
    %1 = memref.load %arg0[%c0_1, %c0_2] : memref<3x3xf32, #tpu.memory_space<smem>>
    %c0_3 = arith.constant 0 : index
    %c0_4 = arith.constant 0 : index
    %2 = vector.load %arg2[%c0_3, %c0_4] : memref<3x128xf32, #tpu.memory_space<vmem>>, vector<1x128xf32>
    %3 = vector.broadcast %1 : f32 to vector<1x128xf32>
    %4 = arith.mulf %3, %2 : vector<1x128xf32>
    %5 = arith.addf %0, %4 : vector<1x128xf32>
    %c0_5 = arith.constant 0 : index
    %c1 = arith.constant 1 : index
    %6 = memref.load %arg0[%c0_5, %c1] : memref<3x3xf32, #tpu.memory_space<smem>>
    %c1_6 = arith.constant 1 : index
    %c0_7 = arith.constant 0 : index
    %7 = vector.load %arg2[%c1_6, %c0_7] : memref<3x128xf32, #tpu.memory_space<vmem>>, vector<1x128xf32>
    %8 = vector.broadcast %6 : f32 to vector<1x128xf32>
    %9 = arith.mulf %8, %7 : vector<1x128xf32>
    %10 = arith.addf %5, %9 : vector<1x128xf32>
    %c0_8 = arith.constant 0 : index
    %c2 = arith.constant 2 : index
    %11 = memref.load %arg0[%c0_8, %c2] : memref<3x3xf32, #tpu.memory_space<smem>>
    %c2_9 = arith.constant 2 : index
    %c0_10 = arith.constant 0 : index
    %12 = vector.load %arg2[%c2_9, %c0_10] : memref<3x128xf32, #tpu.memory_space<vmem>>, vector<1x128xf32>
    %13 = vector.broadcast %11 : f32 to vector<1x128xf32>
    %14 = arith.mulf %13, %12 : vector<1x128xf32>
    %15 = arith.addf %10, %14 : vector<1x128xf32>
    %cst = arith.constant 0.000000e+00 : f32
    %16 = vector.broadcast %cst : f32 to vector<1x128xf32>
    %17 = arith.maximumf %15, %16 : vector<1x128xf32>
    %c0_11 = arith.constant 0 : index
    %c0_12 = arith.constant 0 : index
    %18 = vector.load %arg3[%c0_11, %c0_12] : memref<1x128xf32, #tpu.memory_space<vmem>>, vector<1x128xf32>
    %c1_13 = arith.constant 1 : index
    %c0_14 = arith.constant 0 : index
    %19 = memref.load %arg0[%c1_13, %c0_14] : memref<3x3xf32, #tpu.memory_space<smem>>
    %c0_15 = arith.constant 0 : index
    %c0_16 = arith.constant 0 : index
    %20 = vector.load %arg2[%c0_15, %c0_16] : memref<3x128xf32, #tpu.memory_space<vmem>>, vector<1x128xf32>
    %21 = vector.broadcast %19 : f32 to vector<1x128xf32>
    %22 = arith.mulf %21, %20 : vector<1x128xf32>
    %23 = arith.addf %18, %22 : vector<1x128xf32>
    %c1_17 = arith.constant 1 : index
    %c1_18 = arith.constant 1 : index
    %24 = memref.load %arg0[%c1_17, %c1_18] : memref<3x3xf32, #tpu.memory_space<smem>>
    %c1_19 = arith.constant 1 : index
    %c0_20 = arith.constant 0 : index
    %25 = vector.load %arg2[%c1_19, %c0_20] : memref<3x128xf32, #tpu.memory_space<vmem>>, vector<1x128xf32>
    %26 = vector.broadcast %24 : f32 to vector<1x128xf32>
    %27 = arith.mulf %26, %25 : vector<1x128xf32>
    %28 = arith.addf %23, %27 : vector<1x128xf32>
    %c1_21 = arith.constant 1 : index
    %c2_22 = arith.constant 2 : index
    %29 = memref.load %arg0[%c1_21, %c2_22] : memref<3x3xf32, #tpu.memory_space<smem>>
    %c2_23 = arith.constant 2 : index
    %c0_24 = arith.constant 0 : index
    %30 = vector.load %arg2[%c2_23, %c0_24] : memref<3x128xf32, #tpu.memory_space<vmem>>, vector<1x128xf32>
    %31 = vector.broadcast %29 : f32 to vector<1x128xf32>
    %32 = arith.mulf %31, %30 : vector<1x128xf32>
    %33 = arith.addf %28, %32 : vector<1x128xf32>
    %cst_25 = arith.constant 0.000000e+00 : f32
    %34 = vector.broadcast %cst_25 : f32 to vector<1x128xf32>
    %35 = arith.maximumf %33, %34 : vector<1x128xf32>
    %c0_26 = arith.constant 0 : index
    %c0_27 = arith.constant 0 : index
    %36 = vector.load %arg3[%c0_26, %c0_27] : memref<1x128xf32, #tpu.memory_space<vmem>>, vector<1x128xf32>
    %c2_28 = arith.constant 2 : index
    %c0_29 = arith.constant 0 : index
    %37 = memref.load %arg0[%c2_28, %c0_29] : memref<3x3xf32, #tpu.memory_space<smem>>
    %c0_30 = arith.constant 0 : index
    %c0_31 = arith.constant 0 : index
    %38 = vector.load %arg2[%c0_30, %c0_31] : memref<3x128xf32, #tpu.memory_space<vmem>>, vector<1x128xf32>
    %39 = vector.broadcast %37 : f32 to vector<1x128xf32>
    %40 = arith.mulf %39, %38 : vector<1x128xf32>
    %41 = arith.addf %36, %40 : vector<1x128xf32>
    %c2_32 = arith.constant 2 : index
    %c1_33 = arith.constant 1 : index
    %42 = memref.load %arg0[%c2_32, %c1_33] : memref<3x3xf32, #tpu.memory_space<smem>>
    %c1_34 = arith.constant 1 : index
    %c0_35 = arith.constant 0 : index
    %43 = vector.load %arg2[%c1_34, %c0_35] : memref<3x128xf32, #tpu.memory_space<vmem>>, vector<1x128xf32>
    %44 = vector.broadcast %42 : f32 to vector<1x128xf32>
    %45 = arith.mulf %44, %43 : vector<1x128xf32>
    %46 = arith.addf %41, %45 : vector<1x128xf32>
    %c2_36 = arith.constant 2 : index
    %c2_37 = arith.constant 2 : index
    %47 = memref.load %arg0[%c2_36, %c2_37] : memref<3x3xf32, #tpu.memory_space<smem>>
    %c2_38 = arith.constant 2 : index
    %c0_39 = arith.constant 0 : index
    %48 = vector.load %arg2[%c2_38, %c0_39] : memref<3x128xf32, #tpu.memory_space<vmem>>, vector<1x128xf32>
    %49 = vector.broadcast %47 : f32 to vector<1x128xf32>
    %50 = arith.mulf %49, %48 : vector<1x128xf32>
    %51 = arith.addf %46, %50 : vector<1x128xf32>
    %cst_40 = arith.constant 0.000000e+00 : f32
    %52 = vector.broadcast %cst_40 : f32 to vector<1x128xf32>
    %53 = arith.maximumf %51, %52 : vector<1x128xf32>
    %c0_41 = arith.constant 0 : index
    %c0_42 = arith.constant 0 : index
    %54 = vector.load %arg5[%c0_41, %c0_42] : memref<1x128xf32, #tpu.memory_space<vmem>>, vector<1x128xf32>
    %c0_43 = arith.constant 0 : index
    %c0_44 = arith.constant 0 : index
    %55 = memref.load %arg0[%c0_43, %c0_44] : memref<3x3xf32, #tpu.memory_space<smem>>
    %c0_45 = arith.constant 0 : index
    %c0_46 = arith.constant 0 : index
    %56 = vector.load %arg4[%c0_45, %c0_46] : memref<3x128xf32, #tpu.memory_space<vmem>>, vector<1x128xf32>
    %57 = vector.broadcast %55 : f32 to vector<1x128xf32>
    %58 = arith.mulf %57, %56 : vector<1x128xf32>
    %59 = arith.addf %54, %58 : vector<1x128xf32>
    %c1_47 = arith.constant 1 : index
    %c0_48 = arith.constant 0 : index
    %60 = memref.load %arg0[%c1_47, %c0_48] : memref<3x3xf32, #tpu.memory_space<smem>>
    %c1_49 = arith.constant 1 : index
    %c0_50 = arith.constant 0 : index
    %61 = vector.load %arg4[%c1_49, %c0_50] : memref<3x128xf32, #tpu.memory_space<vmem>>, vector<1x128xf32>
    %62 = vector.broadcast %60 : f32 to vector<1x128xf32>
    %63 = arith.mulf %62, %61 : vector<1x128xf32>
    %64 = arith.addf %59, %63 : vector<1x128xf32>
    %c2_51 = arith.constant 2 : index
    %c0_52 = arith.constant 0 : index
    %65 = memref.load %arg0[%c2_51, %c0_52] : memref<3x3xf32, #tpu.memory_space<smem>>
    %c2_53 = arith.constant 2 : index
    %c0_54 = arith.constant 0 : index
    %66 = vector.load %arg4[%c2_53, %c0_54] : memref<3x128xf32, #tpu.memory_space<vmem>>, vector<1x128xf32>
    %67 = vector.broadcast %65 : f32 to vector<1x128xf32>
    %68 = arith.mulf %67, %66 : vector<1x128xf32>
    %69 = arith.addf %64, %68 : vector<1x128xf32>
    %cst_55 = arith.constant 0.000000e+00 : f32
    %70 = vector.broadcast %cst_55 : f32 to vector<1x128xf32>
    %71 = arith.maximumf %69, %70 : vector<1x128xf32>
    %c0_56 = arith.constant 0 : index
    %c0_57 = arith.constant 0 : index
    %72 = vector.load %arg5[%c0_56, %c0_57] : memref<1x128xf32, #tpu.memory_space<vmem>>, vector<1x128xf32>
    %c0_58 = arith.constant 0 : index
    %c1_59 = arith.constant 1 : index
    %73 = memref.load %arg0[%c0_58, %c1_59] : memref<3x3xf32, #tpu.memory_space<smem>>
    %c0_60 = arith.constant 0 : index
    %c0_61 = arith.constant 0 : index
    %74 = vector.load %arg4[%c0_60, %c0_61] : memref<3x128xf32, #tpu.memory_space<vmem>>, vector<1x128xf32>
    %75 = vector.broadcast %73 : f32 to vector<1x128xf32>
    %76 = arith.mulf %75, %74 : vector<1x128xf32>
    %77 = arith.addf %72, %76 : vector<1x128xf32>
    %c1_62 = arith.constant 1 : index
    %c1_63 = arith.constant 1 : index
    %78 = memref.load %arg0[%c1_62, %c1_63] : memref<3x3xf32, #tpu.memory_space<smem>>
    %c1_64 = arith.constant 1 : index
    %c0_65 = arith.constant 0 : index
    %79 = vector.load %arg4[%c1_64, %c0_65] : memref<3x128xf32, #tpu.memory_space<vmem>>, vector<1x128xf32>
    %80 = vector.broadcast %78 : f32 to vector<1x128xf32>
    %81 = arith.mulf %80, %79 : vector<1x128xf32>
    %82 = arith.addf %77, %81 : vector<1x128xf32>
    %c2_66 = arith.constant 2 : index
    %c1_67 = arith.constant 1 : index
    %83 = memref.load %arg0[%c2_66, %c1_67] : memref<3x3xf32, #tpu.memory_space<smem>>
    %c2_68 = arith.constant 2 : index
    %c0_69 = arith.constant 0 : index
    %84 = vector.load %arg4[%c2_68, %c0_69] : memref<3x128xf32, #tpu.memory_space<vmem>>, vector<1x128xf32>
    %85 = vector.broadcast %83 : f32 to vector<1x128xf32>
    %86 = arith.mulf %85, %84 : vector<1x128xf32>
    %87 = arith.addf %82, %86 : vector<1x128xf32>
    %cst_70 = arith.constant 0.000000e+00 : f32
    %88 = vector.broadcast %cst_70 : f32 to vector<1x128xf32>
    %89 = arith.maximumf %87, %88 : vector<1x128xf32>
    %c0_71 = arith.constant 0 : index
    %c0_72 = arith.constant 0 : index
    %90 = vector.load %arg5[%c0_71, %c0_72] : memref<1x128xf32, #tpu.memory_space<vmem>>, vector<1x128xf32>
    %c0_73 = arith.constant 0 : index
    %c2_74 = arith.constant 2 : index
    %91 = memref.load %arg0[%c0_73, %c2_74] : memref<3x3xf32, #tpu.memory_space<smem>>
    %c0_75 = arith.constant 0 : index
    %c0_76 = arith.constant 0 : index
    %92 = vector.load %arg4[%c0_75, %c0_76] : memref<3x128xf32, #tpu.memory_space<vmem>>, vector<1x128xf32>
    %93 = vector.broadcast %91 : f32 to vector<1x128xf32>
    %94 = arith.mulf %93, %92 : vector<1x128xf32>
    %95 = arith.addf %90, %94 : vector<1x128xf32>
    %c1_77 = arith.constant 1 : index
    %c2_78 = arith.constant 2 : index
    %96 = memref.load %arg0[%c1_77, %c2_78] : memref<3x3xf32, #tpu.memory_space<smem>>
    %c1_79 = arith.constant 1 : index
    %c0_80 = arith.constant 0 : index
    %97 = vector.load %arg4[%c1_79, %c0_80] : memref<3x128xf32, #tpu.memory_space<vmem>>, vector<1x128xf32>
    %98 = vector.broadcast %96 : f32 to vector<1x128xf32>
    %99 = arith.mulf %98, %97 : vector<1x128xf32>
    %100 = arith.addf %95, %99 : vector<1x128xf32>
    %c2_81 = arith.constant 2 : index
    %c2_82 = arith.constant 2 : index
    %101 = memref.load %arg0[%c2_81, %c2_82] : memref<3x3xf32, #tpu.memory_space<smem>>
    %c2_83 = arith.constant 2 : index
    %c0_84 = arith.constant 0 : index
    %102 = vector.load %arg4[%c2_83, %c0_84] : memref<3x128xf32, #tpu.memory_space<vmem>>, vector<1x128xf32>
    %103 = vector.broadcast %101 : f32 to vector<1x128xf32>
    %104 = arith.mulf %103, %102 : vector<1x128xf32>
    %105 = arith.addf %100, %104 : vector<1x128xf32>
    %cst_85 = arith.constant 0.000000e+00 : f32
    %106 = vector.broadcast %cst_85 : f32 to vector<1x128xf32>
    %107 = arith.maximumf %105, %106 : vector<1x128xf32>
    %c0_86 = arith.constant 0 : index
    %c0_87 = arith.constant 0 : index
    %108 = vector.load %arg7[%c0_86, %c0_87] : memref<1x128xf32, #tpu.memory_space<vmem>>, vector<1x128xf32>
    %c0_88 = arith.constant 0 : index
    %c0_89 = arith.constant 0 : index
    %109 = memref.load %arg0[%c0_88, %c0_89] : memref<3x3xf32, #tpu.memory_space<smem>>
    %c0_90 = arith.constant 0 : index
    %c0_91 = arith.constant 0 : index
    %110 = vector.load %arg6[%c0_90, %c0_91] : memref<9x128xf32, #tpu.memory_space<vmem>>, vector<1x128xf32>
    %111 = vector.broadcast %109 : f32 to vector<1x128xf32>
    %112 = arith.mulf %111, %110 : vector<1x128xf32>
    %113 = arith.addf %108, %112 : vector<1x128xf32>
    %c0_92 = arith.constant 0 : index
    %c1_93 = arith.constant 1 : index
    %114 = memref.load %arg0[%c0_92, %c1_93] : memref<3x3xf32, #tpu.memory_space<smem>>
    %c1_94 = arith.constant 1 : index
    %c0_95 = arith.constant 0 : index
    %115 = vector.load %arg6[%c1_94, %c0_95] : memref<9x128xf32, #tpu.memory_space<vmem>>, vector<1x128xf32>
    %116 = vector.broadcast %114 : f32 to vector<1x128xf32>
    %117 = arith.mulf %116, %115 : vector<1x128xf32>
    %118 = arith.addf %113, %117 : vector<1x128xf32>
    %c0_96 = arith.constant 0 : index
    %c2_97 = arith.constant 2 : index
    %119 = memref.load %arg0[%c0_96, %c2_97] : memref<3x3xf32, #tpu.memory_space<smem>>
    %c2_98 = arith.constant 2 : index
    %c0_99 = arith.constant 0 : index
    %120 = vector.load %arg6[%c2_98, %c0_99] : memref<9x128xf32, #tpu.memory_space<vmem>>, vector<1x128xf32>
    %121 = vector.broadcast %119 : f32 to vector<1x128xf32>
    %122 = arith.mulf %121, %120 : vector<1x128xf32>
    %123 = arith.addf %118, %122 : vector<1x128xf32>
    %c1_100 = arith.constant 1 : index
    %c0_101 = arith.constant 0 : index
    %124 = memref.load %arg0[%c1_100, %c0_101] : memref<3x3xf32, #tpu.memory_space<smem>>
    %c3 = arith.constant 3 : index
    %c0_102 = arith.constant 0 : index
    %125 = vector.load %arg6[%c3, %c0_102] : memref<9x128xf32, #tpu.memory_space<vmem>>, vector<1x128xf32>
    %126 = vector.broadcast %124 : f32 to vector<1x128xf32>
    %127 = arith.mulf %126, %125 : vector<1x128xf32>
    %128 = arith.addf %123, %127 : vector<1x128xf32>
    %c1_103 = arith.constant 1 : index
    %c1_104 = arith.constant 1 : index
    %129 = memref.load %arg0[%c1_103, %c1_104] : memref<3x3xf32, #tpu.memory_space<smem>>
    %c4 = arith.constant 4 : index
    %c0_105 = arith.constant 0 : index
    %130 = vector.load %arg6[%c4, %c0_105] : memref<9x128xf32, #tpu.memory_space<vmem>>, vector<1x128xf32>
    %131 = vector.broadcast %129 : f32 to vector<1x128xf32>
    %132 = arith.mulf %131, %130 : vector<1x128xf32>
    %133 = arith.addf %128, %132 : vector<1x128xf32>
    %c1_106 = arith.constant 1 : index
    %c2_107 = arith.constant 2 : index
    %134 = memref.load %arg0[%c1_106, %c2_107] : memref<3x3xf32, #tpu.memory_space<smem>>
    %c5 = arith.constant 5 : index
    %c0_108 = arith.constant 0 : index
    %135 = vector.load %arg6[%c5, %c0_108] : memref<9x128xf32, #tpu.memory_space<vmem>>, vector<1x128xf32>
    %136 = vector.broadcast %134 : f32 to vector<1x128xf32>
    %137 = arith.mulf %136, %135 : vector<1x128xf32>
    %138 = arith.addf %133, %137 : vector<1x128xf32>
    %c2_109 = arith.constant 2 : index
    %c0_110 = arith.constant 0 : index
    %139 = memref.load %arg0[%c2_109, %c0_110] : memref<3x3xf32, #tpu.memory_space<smem>>
    %c6 = arith.constant 6 : index
    %c0_111 = arith.constant 0 : index
    %140 = vector.load %arg6[%c6, %c0_111] : memref<9x128xf32, #tpu.memory_space<vmem>>, vector<1x128xf32>
    %141 = vector.broadcast %139 : f32 to vector<1x128xf32>
    %142 = arith.mulf %141, %140 : vector<1x128xf32>
    %143 = arith.addf %138, %142 : vector<1x128xf32>
    %c2_112 = arith.constant 2 : index
    %c1_113 = arith.constant 1 : index
    %144 = memref.load %arg0[%c2_112, %c1_113] : memref<3x3xf32, #tpu.memory_space<smem>>
    %c7 = arith.constant 7 : index
    %c0_114 = arith.constant 0 : index
    %145 = vector.load %arg6[%c7, %c0_114] : memref<9x128xf32, #tpu.memory_space<vmem>>, vector<1x128xf32>
    %146 = vector.broadcast %144 : f32 to vector<1x128xf32>
    %147 = arith.mulf %146, %145 : vector<1x128xf32>
    %148 = arith.addf %143, %147 : vector<1x128xf32>
    %c2_115 = arith.constant 2 : index
    %c2_116 = arith.constant 2 : index
    %149 = memref.load %arg0[%c2_115, %c2_116] : memref<3x3xf32, #tpu.memory_space<smem>>
    %c8 = arith.constant 8 : index
    %c0_117 = arith.constant 0 : index
    %150 = vector.load %arg6[%c8, %c0_117] : memref<9x128xf32, #tpu.memory_space<vmem>>, vector<1x128xf32>
    %151 = vector.broadcast %149 : f32 to vector<1x128xf32>
    %152 = arith.mulf %151, %150 : vector<1x128xf32>
    %153 = arith.addf %148, %152 : vector<1x128xf32>
    %cst_118 = arith.constant 0.000000e+00 : f32
    %154 = vector.broadcast %cst_118 : f32 to vector<1x128xf32>
    %155 = arith.maximumf %153, %154 : vector<1x128xf32>
    %c0_119 = arith.constant 0 : index
    %c0_120 = arith.constant 0 : index
    %156 = vector.load %arg9[%c0_119, %c0_120] : memref<1x128xf32, #tpu.memory_space<vmem>>, vector<1x128xf32>
    %c0_121 = arith.constant 0 : index
    %c0_122 = arith.constant 0 : index
    %c0_123 = arith.constant 0 : index
    %157 = vector.load %arg8[%c0_121, %c0_122, %c0_123] : memref<7x128x128xf32, #tpu.memory_space<vmem>>, vector<1x128x128xf32>
    %158 = vector.shape_cast %157 : vector<1x128x128xf32> to vector<128x128xf32>
    %cst_124 = arith.constant dense<0.000000e+00> : vector<1x128xf32>
    %159 = tpu.matmul %17, %158, %cst_124 {dimension_numbers = #tpu.dot_dimension_numbers<[1], [0], [0], [1], [0, 0, 1, 1], [], []>} : vector<1x128xf32>, vector<128x128xf32>, vector<1x128xf32> -> vector<1x128xf32>
    %160 = arith.addf %156, %159 : vector<1x128xf32>
    %c1_125 = arith.constant 1 : index
    %c0_126 = arith.constant 0 : index
    %c0_127 = arith.constant 0 : index
    %161 = vector.load %arg8[%c1_125, %c0_126, %c0_127] : memref<7x128x128xf32, #tpu.memory_space<vmem>>, vector<1x128x128xf32>
    %162 = vector.shape_cast %161 : vector<1x128x128xf32> to vector<128x128xf32>
    %cst_128 = arith.constant dense<0.000000e+00> : vector<1x128xf32>
    %163 = tpu.matmul %35, %162, %cst_128 {dimension_numbers = #tpu.dot_dimension_numbers<[1], [0], [0], [1], [0, 0, 1, 1], [], []>} : vector<1x128xf32>, vector<128x128xf32>, vector<1x128xf32> -> vector<1x128xf32>
    %164 = arith.addf %160, %163 : vector<1x128xf32>
    %c2_129 = arith.constant 2 : index
    %c0_130 = arith.constant 0 : index
    %c0_131 = arith.constant 0 : index
    %165 = vector.load %arg8[%c2_129, %c0_130, %c0_131] : memref<7x128x128xf32, #tpu.memory_space<vmem>>, vector<1x128x128xf32>
    %166 = vector.shape_cast %165 : vector<1x128x128xf32> to vector<128x128xf32>
    %cst_132 = arith.constant dense<0.000000e+00> : vector<1x128xf32>
    %167 = tpu.matmul %53, %166, %cst_132 {dimension_numbers = #tpu.dot_dimension_numbers<[1], [0], [0], [1], [0, 0, 1, 1], [], []>} : vector<1x128xf32>, vector<128x128xf32>, vector<1x128xf32> -> vector<1x128xf32>
    %168 = arith.addf %164, %167 : vector<1x128xf32>
    %c3_133 = arith.constant 3 : index
    %c0_134 = arith.constant 0 : index
    %c0_135 = arith.constant 0 : index
    %169 = vector.load %arg8[%c3_133, %c0_134, %c0_135] : memref<7x128x128xf32, #tpu.memory_space<vmem>>, vector<1x128x128xf32>
    %170 = vector.shape_cast %169 : vector<1x128x128xf32> to vector<128x128xf32>
    %cst_136 = arith.constant dense<0.000000e+00> : vector<1x128xf32>
    %171 = tpu.matmul %71, %170, %cst_136 {dimension_numbers = #tpu.dot_dimension_numbers<[1], [0], [0], [1], [0, 0, 1, 1], [], []>} : vector<1x128xf32>, vector<128x128xf32>, vector<1x128xf32> -> vector<1x128xf32>
    %172 = arith.addf %168, %171 : vector<1x128xf32>
    %c4_137 = arith.constant 4 : index
    %c0_138 = arith.constant 0 : index
    %c0_139 = arith.constant 0 : index
    %173 = vector.load %arg8[%c4_137, %c0_138, %c0_139] : memref<7x128x128xf32, #tpu.memory_space<vmem>>, vector<1x128x128xf32>
    %174 = vector.shape_cast %173 : vector<1x128x128xf32> to vector<128x128xf32>
    %cst_140 = arith.constant dense<0.000000e+00> : vector<1x128xf32>
    %175 = tpu.matmul %89, %174, %cst_140 {dimension_numbers = #tpu.dot_dimension_numbers<[1], [0], [0], [1], [0, 0, 1, 1], [], []>} : vector<1x128xf32>, vector<128x128xf32>, vector<1x128xf32> -> vector<1x128xf32>
    %176 = arith.addf %172, %175 : vector<1x128xf32>
    %c5_141 = arith.constant 5 : index
    %c0_142 = arith.constant 0 : index
    %c0_143 = arith.constant 0 : index
    %177 = vector.load %arg8[%c5_141, %c0_142, %c0_143] : memref<7x128x128xf32, #tpu.memory_space<vmem>>, vector<1x128x128xf32>
    %178 = vector.shape_cast %177 : vector<1x128x128xf32> to vector<128x128xf32>
    %cst_144 = arith.constant dense<0.000000e+00> : vector<1x128xf32>
    %179 = tpu.matmul %107, %178, %cst_144 {dimension_numbers = #tpu.dot_dimension_numbers<[1], [0], [0], [1], [0, 0, 1, 1], [], []>} : vector<1x128xf32>, vector<128x128xf32>, vector<1x128xf32> -> vector<1x128xf32>
    %180 = arith.addf %176, %179 : vector<1x128xf32>
    %c6_145 = arith.constant 6 : index
    %c0_146 = arith.constant 0 : index
    %c0_147 = arith.constant 0 : index
    %181 = vector.load %arg8[%c6_145, %c0_146, %c0_147] : memref<7x128x128xf32, #tpu.memory_space<vmem>>, vector<1x128x128xf32>
    %182 = vector.shape_cast %181 : vector<1x128x128xf32> to vector<128x128xf32>
    %cst_148 = arith.constant dense<0.000000e+00> : vector<1x128xf32>
    %183 = tpu.matmul %155, %182, %cst_148 {dimension_numbers = #tpu.dot_dimension_numbers<[1], [0], [0], [1], [0, 0, 1, 1], [], []>} : vector<1x128xf32>, vector<128x128xf32>, vector<1x128xf32> -> vector<1x128xf32>
    %184 = arith.addf %180, %183 : vector<1x128xf32>
    %c0_149 = arith.constant 0 : index
    %185 = memref.load %arg1[%c0_149] : memref<3xf32, #tpu.memory_space<smem>>
    %cst_150 = arith.constant 0.000000e+00 : f32
    %186 = vector.broadcast %cst_150 : f32 to vector<1x128xf32>
    %187 = arith.maximumf %184, %186 : vector<1x128xf32>
    %cst_151 = arith.constant 0.000000e+00 : f32
    %188 = vector.broadcast %cst_151 : f32 to vector<1x128xf32>
    %189 = arith.minimumf %184, %188 : vector<1x128xf32>
    %190 = vector.broadcast %185 : f32 to vector<1x128xf32>
    %191 = arith.mulf %190, %189 : vector<1x128xf32>
    %192 = arith.addf %187, %191 : vector<1x128xf32>
    %c0_152 = arith.constant 0 : index
    %c0_153 = arith.constant 0 : index
    %193 = vector.load %arg10[%c0_152, %c0_153] : memref<128x128xf32, #tpu.memory_space<vmem>>, vector<128x128xf32>
    %cst_154 = arith.constant dense<0.000000e+00> : vector<1x128xf32>
    %194 = tpu.matmul %192, %193, %cst_154 {dimension_numbers = #tpu.dot_dimension_numbers<[1], [0], [0], [1], [0, 0, 1, 1], [], []>} : vector<1x128xf32>, vector<128x128xf32>, vector<1x128xf32> -> vector<1x128xf32>
    %c0_155 = arith.constant 0 : index
    %c0_156 = arith.constant 0 : index
    %195 = vector.load %arg11[%c0_155, %c0_156] : memref<1x128xf32, #tpu.memory_space<vmem>>, vector<1x128xf32>
    %196 = arith.addf %194, %195 : vector<1x128xf32>
    %c1_157 = arith.constant 1 : index
    %197 = memref.load %arg1[%c1_157] : memref<3xf32, #tpu.memory_space<smem>>
    %cst_158 = arith.constant 0.000000e+00 : f32
    %198 = vector.broadcast %cst_158 : f32 to vector<1x128xf32>
    %199 = arith.maximumf %196, %198 : vector<1x128xf32>
    %cst_159 = arith.constant 0.000000e+00 : f32
    %200 = vector.broadcast %cst_159 : f32 to vector<1x128xf32>
    %201 = arith.minimumf %196, %200 : vector<1x128xf32>
    %202 = vector.broadcast %197 : f32 to vector<1x128xf32>
    %203 = arith.mulf %202, %201 : vector<1x128xf32>
    %204 = arith.addf %199, %203 : vector<1x128xf32>
    %c0_160 = arith.constant 0 : index
    %c0_161 = arith.constant 0 : index
    %205 = vector.load %arg12[%c0_160, %c0_161] : memref<128x128xf32, #tpu.memory_space<vmem>>, vector<128x128xf32>
    %cst_162 = arith.constant dense<0.000000e+00> : vector<1x128xf32>
    %206 = tpu.matmul %204, %205, %cst_162 {dimension_numbers = #tpu.dot_dimension_numbers<[1], [0], [0], [1], [0, 0, 1, 1], [], []>} : vector<1x128xf32>, vector<128x128xf32>, vector<1x128xf32> -> vector<1x128xf32>
    %c0_163 = arith.constant 0 : index
    %c0_164 = arith.constant 0 : index
    %207 = vector.load %arg13[%c0_163, %c0_164] : memref<1x128xf32, #tpu.memory_space<vmem>>, vector<1x128xf32>
    %208 = arith.addf %206, %207 : vector<1x128xf32>
    %c2_165 = arith.constant 2 : index
    %209 = memref.load %arg1[%c2_165] : memref<3xf32, #tpu.memory_space<smem>>
    %cst_166 = arith.constant 0.000000e+00 : f32
    %210 = vector.broadcast %cst_166 : f32 to vector<1x128xf32>
    %211 = arith.maximumf %208, %210 : vector<1x128xf32>
    %cst_167 = arith.constant 0.000000e+00 : f32
    %212 = vector.broadcast %cst_167 : f32 to vector<1x128xf32>
    %213 = arith.minimumf %208, %212 : vector<1x128xf32>
    %214 = vector.broadcast %209 : f32 to vector<1x128xf32>
    %215 = arith.mulf %214, %213 : vector<1x128xf32>
    %216 = arith.addf %211, %215 : vector<1x128xf32>
    %c0_168 = arith.constant 0 : index
    %c0_169 = arith.constant 0 : index
    %217 = vector.load %arg14[%c0_168, %c0_169] : memref<128x128xf32, #tpu.memory_space<vmem>>, vector<128x128xf32>
    %cst_170 = arith.constant dense<0.000000e+00> : vector<1x128xf32>
    %218 = tpu.matmul %216, %217, %cst_170 {dimension_numbers = #tpu.dot_dimension_numbers<[1], [0], [0], [1], [0, 0, 1, 1], [], []>} : vector<1x128xf32>, vector<128x128xf32>, vector<1x128xf32> -> vector<1x128xf32>
    %c0_171 = arith.constant 0 : index
    %c0_172 = arith.constant 0 : index
    %219 = vector.load %arg15[%c0_171, %c0_172] : memref<1x128xf32, #tpu.memory_space<vmem>>, vector<1x128xf32>
    %220 = arith.addf %218, %219 : vector<1x128xf32>
    %c0_173 = arith.constant 0 : index
    %c0_174 = arith.constant 0 : index
    %221 = vector.load %arg16[%c0_173, %c0_174] : memref<1x128xf32, #tpu.memory_space<vmem>>, vector<1x128xf32>
    tpu.vector_store %arg16[%c0_173, %c0_174], %220 {strides = array<i32>} : memref<1x128xf32, #tpu.memory_space<vmem>>, vector<1x128xf32>,
    return
  }
}

</mosaic_0001>

<bundles_post_ra>
// kernel: conv_actor_forward.1
= control target key start
LH: loop header
LB: loop body
LE: loop exit
PB: predicated region body
PF: predicated region fallthrough
CT: control target
= control target key end

     0   :  { %s1143_s0 = inlined_call_operand.vmem [shape: f32[3,3], index: 0, kind: input, shape index: {}]   ;;  %s1144_s1 = inlined_call_operand.vmem [shape: f32[3], index: 1, kind: input, shape index: {}]   ;;  %s1145_s2 = inlined_call_operand.vmem [shape: f32[3,128], index: 2, kind: input, shape index: {}]   ;;  %s1146_s3 = inlined_call_operand.hbm [shape: f32[1,128], index: 3, kind: input, shape index: {}]   ;;  %s1147_s4 = inlined_call_operand.vmem [shape: f32[3,128], index: 4, kind: input, shape index: {}]   ;;  %s1148_s5 = inlined_call_operand.vmem [shape: f32[1,128], index: 5, kind: input, shape index: {}]   ;;  %s1149_s6 = inlined_call_operand.hbm [shape: f32[9,128], index: 6, kind: input, shape index: {}]   ;;  %s1150_s7 = inlined_call_operand.vmem [shape: f32[1,128], index: 7, kind: input, shape index: {}]   ;;  %s1151_s8 = inlined_call_operand.hbm [shape: f32[7,128,128], index: 8, kind: input, shape index: {}]   ;;  %s1152_s9 = inlined_call_operand.vmem [shape: f32[1,128], index: 9, kind: input, shape index: {}]   ;;  %s1153_s10 = inlined_call_operand.hbm [shape: f32[128,128], index: 10, kind: input, shape index: {}]   ;;  %s1154_s11 = inlined_call_operand.vmem [shape: f32[1,128], index: 11, kind: input, shape index: {}]   ;;  %s1155_s12 = inlined_call_operand.hbm [shape: f32[128,128], index: 12, kind: input, shape index: {}]   ;;  %s1156_s13 = inlined_call_operand.vmem [shape: f32[1,128], index: 13, kind: input, shape index: {}]   ;;  %s1157_s14 = inlined_call_operand.hbm [shape: f32[128,128], index: 14, kind: input, shape index: {}]   ;;  %s1158_s15 = inlined_call_operand.vmem [shape: f32[1,128], index: 15, kind: input, shape index: {}]   ;;  %s1159_s16 = inlined_call_operand.vmem [shape: f32[1,128], index: 16, kind: output, shape index: {}]  }
   0x1   :  { %1160 = sst [smem:[#allocation22_spill]] %s1143_s0 }
   0x2   :  { %21 = vsyncpa [#allocation4], 0 }
   0x3   :  { %22 = vsyncpa [#allocation6], 0 }
   0x4   :  { %23 = vsyncpa [#allocation3], 0 }
   0x5   :  { %24 = vsyncpa [#allocation9], 0 }
   0x6   :  { %25 = vsyncpa [#allocation12], 0  ;;  %s66_s23 = sshll.u32 %s1149_s6, 4  ;;  %s67_s23 = int_to_ptr.hbm [resolvable:$true] %s66_s23 }
   0x7   :  { %26 = vsyncpa [#allocation15], 0  ;;  %s873_s24 = smov [#allocation8]   ;;  %s96_s28 = sshll.u32 %s1153_s10, 4  ;;  %s97_s28 = int_to_ptr.hbm [resolvable:$true] %s96_s28 }
   0x8   :  { %s68_s25 = sshll.u32 %s873_s24, 4  ;;  %s874_s29 = smov 128   ;;  %s69_s25 = int_to_ptr.vmem [resolvable:$true] %s68_s25 }
   0x9   :  { %s875_s30 = smov 8   ;;  %s876_s0 = smov [#allocation11]  }
   0xa   :  { %74 = dma.hbm_to_vmem [thread:$0]  %s67_s23, 256, %s69_s25, [#allocation9], %s874_s29, %s874_s29, %s875_s30  }
   0xb   :  { %s98_s17 = sshll.u32 %s876_s0, 4  ;;  %s1161_s19 = sld [smem:[#allocation22_spill]]  ;;  %s99_s17 = int_to_ptr.vmem [resolvable:$true] %s98_s17 }
   0xc   :  { %104 = dma.hbm_to_vmem [thread:$0]  %s97_s28, 2048, %s99_s17, [#allocation12], %s874_s29, %s874_s29, %s875_s30  }
   0xd   :  { %s41_s22 = sshll.u32 %s1144_s1, 4  ;;  %s877_s24 = smov [#allocation2]   ;;  %s42_s22 = int_to_ptr.vmem [resolvable:$true] %s41_s22 }
   0xe   :  { %s878_s23 = smov [#allocation5]   ;;  %s52_s27 = sshll.u32 %s1146_s3, 4  ;;  %s53_s27 = int_to_ptr.hbm [resolvable:$true] %s52_s27 }
   0xf   :  { %44 = dma.vmem_to_smem %s42_s22, 16, %s878_s23, [#allocation6]  }
  0x10   :  { %s879_s0 = smov [#allocation7]   ;;  %s81_s28 = sshll.u32 %s1151_s8, 4  ;;  %s82_s28 = int_to_ptr.hbm [resolvable:$true] %s81_s28 }
  0x11   :  { %s32_s20 = sshll.u32 %s1161_s19, 4  ;;  %s54_s18 = sshll.u32 %s879_s0, 4  ;;  %s33_s20 = int_to_ptr.vmem [resolvable:$true] %s32_s20  ;;  %s55_s18 = int_to_ptr.vmem [resolvable:$true] %s54_s18 }
  0x12   :  { %35 = dma.vmem_to_smem %s33_s20, 64, %s877_s24, [#allocation4]  }
  0x13   :  { %57 = dma.hbm_to_vmem [thread:$0]  %s53_s27, 16, %s55_s18, [#allocation3]  }
  0x14   :  { %s880_s1 = smov [#allocation10]   ;;  %s111_s21 = sshll.u32 %s1155_s12, 4  ;;  %s112_s21 = int_to_ptr.hbm [resolvable:$true] %s111_s21 }
  0x15   :  { %s83_s17 = sshll.u32 %s880_s1, 4  ;;  %s126_s24 = sshll.u32 %s1157_s14, 4  ;;  %s84_s17 = int_to_ptr.vmem [resolvable:$true] %s83_s17  ;;  %s127_s24 = int_to_ptr.hbm [resolvable:$true] %s126_s24 }
  0x16   :  { %89 = dma.hbm_to_vmem [thread:$0]  %s82_s28, 14336, %s84_s17, [#allocation9], %s874_s29, %s874_s29, %s875_s30  }
  0x17   :  { %s881_s23 = smov [#allocation13]   ;;  %s882_s25 = smov [#allocation14]  }
  0x18   :  { %s113_s8 = sshll.u32 %s881_s23, 4  ;;  %s128_s12 = sshll.u32 %s882_s25, 4  ;;  %s114_s8 = int_to_ptr.vmem [resolvable:$true] %s113_s8  ;;  %s129_s12 = int_to_ptr.vmem [resolvable:$true] %s128_s12 }
  0x19   :  { %119 = dma.hbm_to_vmem [thread:$0]  %s112_s21, 2048, %s114_s8, [#allocation12], %s874_s29, %s874_s29, %s875_s30  }
  0x1a   :  { %134 = dma.hbm_to_vmem [thread:$0]  %s127_s24, 2048, %s129_s12, [#allocation15], %s874_s29, %s874_s29, %s875_s30  }
  0x1b   :  { %861 = dma.done.wait [#allocation4], 64  }
  0x1c   :  { %862 = vsyncadd [#allocation4], 4294967232 }
  0x1d   :  { %863 = dma.done.wait [#allocation6], 16  }
  0x1e   :  { %864 = vsyncadd [#allocation6], 4294967280 }
  0x1f   :  { %865 = dma.done.wait [#allocation3], 16  }
  0x20   :  { %866 = vsyncadd [#allocation3], 4294967280 }
  0x21   :  { %867 = dma.done.wait [#allocation9], 14592  }
  0x22   :  { %868 = vsyncadd [#allocation9], 4294952704 }
  0x23   :  { %869 = dma.done.wait [#allocation12], 4096  }
  0x24   :  { %870 = vsyncadd [#allocation12], 4294963200 }
  0x25   :  { %871 = dma.done.wait [#allocation15], 2048  }
  0x26   :  { %872 = vsyncadd [#allocation15], 4294965248 }
  0x27   :  { %169 = sfence }
  0x28   :  { %v359_v0 = vld [vmem:[#allocation10 + $0x178] sm:$0xff]  ;;  %v358_v2 = vld [vmem:[#allocation10 + $0x170] sm:$0xff]  ;;  %v357_v5 = vld [vmem:[#allocation10 + $0x168] sm:$0xff]  ;;  %s1007_s14 = sld [smem:[#allocation2 + $0x100]] }
  0x29   :  { %v283_v1 = vld [vmem:[#allocation10 + $0x78] sm:$0xff]  ;;  %360 = vmatpush.msra.mxu2 %v359_v0  ;;  %v282_v3 = vld [vmem:[#allocation10 + $0x70] sm:$0xff]  ;;  %v281_v6 = vld [vmem:[#allocation10 + $0x68] sm:$0xff]  ;;  %s1009_s29 = sld [smem:[#allocation2 + $0x101]] }
  0x2a   :  { %284 = vmatpush.msra.mxu0 %v283_v1  ;;  %v321_v4 = vld [vmem:[#allocation10 + $0xf8] sm:$0xff]  ;;  %v320_v7 = vld [vmem:[#allocation10 + $0xf0] sm:$0xff]  ;;  %v319_v8 = vld [vmem:[#allocation10 + $0xe8] sm:$0xff]  ;;  %s1011_s30 = sld [smem:[#allocation2 + $0x102]] }
  0x2b   :  { %322 = vmatpush.msra.mxu1 %v321_v4  ;;  %361 = vmatpush.msra.mxu2 %v358_v2  ;;  %v356_v9 = vld [vmem:[#allocation10 + $0x160] sm:$0xff]  ;;  %v355_v12 = vld [vmem:[#allocation10 + $0x158] sm:$0xff]  ;;  %v354_v15 = vld [vmem:[#allocation10 + $0x150] sm:$0xff]  ;;  %s1013_s26 = sld [smem:[#allocation2]] }
  0x2c   :  { %285 = vmatpush.msra.mxu0 %v282_v3  ;;  %v280_v10 = vld [vmem:[#allocation10 + $0x60] sm:$0xff]  ;;  %v279_v13 = vld [vmem:[#allocation10 + $0x58] sm:$0xff]  ;;  %v278_v16 = vld [vmem:[#allocation10 + $0x50] sm:$0xff]  ;;  %s1015_s27 = sld [smem:[#allocation2 + $0x1]] }
  0x2d   :  { %323 = vmatpush.msra.mxu1 %v320_v7  ;;  %362 = vmatpush.msra.mxu2 %v357_v5  ;;  %v318_v11 = vld [vmem:[#allocation10 + $0xe0] sm:$0xff]  ;;  %v317_v14 = vld [vmem:[#allocation10 + $0xd8] sm:$0xff]  ;;  %v316_v17 = vld [vmem:[#allocation10 + $0xd0] sm:$0xff]  ;;  %s1017_s0 = sld [smem:[#allocation2 + $0x2]] }
  0x2e   :  { %286 = vmatpush.msra.mxu0 %v281_v6  ;;  %v353_v18 = vld [vmem:[#allocation10 + $0x148] sm:$0xff]  ;;  %v352_v21 = vld [vmem:[#allocation10 + $0x140] sm:$0xff]  ;;  %v397_v23 = vld [vmem:[#allocation10 + $0x1f8] sm:$0xff]  ;;  %s1019_s18 = sld [smem:[#allocation2 + $0x80]]  ;;  %v1022_v63 = vstv %s1007_s14 }
  0x2f   :  { %324 = vmatpush.msra.mxu1 %v319_v8  ;;  %363 = vmatpush.msra.mxu2 %v356_v9  ;;  %v277_v19 = vld [vmem:[#allocation10 + $0x48] sm:$0xff]  ;;  %v276_v22 = vld [vmem:[#allocation10 + $0x40] sm:$0xff]  ;;  %v396_v25 = vld [vmem:[#allocation10 + $0x1f0] sm:$0xff]  ;;  %v1025_v0 = vstv %s1009_s29  ;;  %s1030_s6 = sld [smem:[#allocation2 + $0x81]] }
  0x30   :  { %287 = vmatpush.msra.mxu0 %v280_v10  ;;  %v315_v20 = vld [vmem:[#allocation10 + $0xc8] sm:$0xff]  ;;  %v314_v24 = vld [vmem:[#allocation10 + $0xc0] sm:$0xff]  ;;  %v351_v26 = vld [vmem:[#allocation10 + $0x138] sm:$0xff]  ;;  %398 = vmatpush.msra.mxu3 %v397_v23  ;;  %v1028_v4 = vstv %s1011_s30  ;;  %s1058_s21 = sld [smem:[#allocation2 + $0x82]] }
  0x31   :  { %325 = vmatpush.msra.mxu1 %v318_v11  ;;  %364 = vmatpush.msra.mxu2 %v355_v12  ;;  %v275_v27 = vld [vmem:[#allocation10 + $0x38] sm:$0xff]  ;;  %v395_v29 = vld [vmem:[#allocation10 + $0x1e8] sm:$0xff]  ;;  %v350_v30 = vld [vmem:[#allocation10 + $0x130] sm:$0xff]  ;;  %v173_v9 = vstv %s1013_s26  ;;  %s681_s29 = sld [smem:[#allocation5 + $0x1]] }
  0x32   :  { %288 = vmatpush.msra.mxu0 %v279_v13  ;;  %v313_v28 = vld [vmem:[#allocation10 + $0xb8] sm:$0xff]  ;;  %v274_v31 = vld [vmem:[#allocation10 + $0x30] sm:$0xff]  ;;  %399 = vmatpush.msra.mxu3 %v396_v25  ;;  %v394_v33 = vld [vmem:[#allocation10 + $0x1e0] sm:$0xff] }
  0x33   :  { %326 = vmatpush.msra.mxu1 %v317_v14  ;;  %365 = vmatpush.msra.mxu2 %v354_v15  ;;  %v312_v32 = vld [vmem:[#allocation10 + $0xb0] sm:$0xff]  ;;  %v349_v34 = vld [vmem:[#allocation10 + $0x128] sm:$0xff]  ;;  %v393_v37 = vld [vmem:[#allocation10 + $0x1d8] sm:$0xff] }
  0x34   :  { %289 = vmatpush.msra.mxu0 %v278_v16  ;;  %v273_v35 = vld [vmem:[#allocation10 + $0x28] sm:$0xff]  ;;  %400 = vmatpush.msra.mxu3 %v395_v29  ;;  %v348_v38 = vld [vmem:[#allocation10 + $0x120] sm:$0xff]  ;;  %v392_v41 = vld [vmem:[#allocation10 + $0x1d0] sm:$0xff]  ;;  %v1056_v16 = vstv %s1015_s27 }
  0x35   :  { %327 = vmatpush.msra.mxu1 %v316_v17  ;;  %366 = vmatpush.msra.mxu2 %v353_v18  ;;  %v311_v36 = vld [vmem:[#allocation10 + $0xa8] sm:$0xff]  ;;  %v272_v39 = vld [vmem:[#allocation10 + $0x20] sm:$0xff]  ;;  %v347_v42 = vld [vmem:[#allocation10 + $0x118] sm:$0xff] }
  0x36   :  { %290 = vmatpush.msra.mxu0 %v277_v19  ;;  %401 = vmatpush.msra.mxu3 %v394_v33  ;;  %v310_v40 = vld [vmem:[#allocation10 + $0xa0] sm:$0xff]  ;;  %v271_v43 = vld [vmem:[#allocation10 + $0x18] sm:$0xff]  ;;  %v391_v45 = vld [vmem:[#allocation10 + $0x1c8] sm:$0xff] }
  0x37   :  { %328 = vmatpush.msra.mxu1 %v315_v20  ;;  %367 = vmatpush.msra.mxu2 %v352_v21  ;;  %v309_v44 = vld [vmem:[#allocation10 + $0x98] sm:$0xff]  ;;  %v346_v46 = vld [vmem:[#allocation10 + $0x110] sm:$0xff]  ;;  %v390_v49 = vld [vmem:[#allocation10 + $0x1c0] sm:$0xff] }
  0x38   :  { %291 = vmatpush.msra.mxu0 %v276_v22  ;;  %402 = vmatpush.msra.mxu3 %v393_v37  ;;  %v270_v47 = vld [vmem:[#allocation10 + $0x10] sm:$0xff]  ;;  %v345_v50 = vld [vmem:[#allocation10 + $0x108] sm:$0xff]  ;;  %v389_v53 = vld [vmem:[#allocation10 + $0x1b8] sm:$0xff]  ;;  %v1065_v22 = vstv %s1017_s0 }
  0x39   :  { %329 = vmatpush.msra.mxu1 %v314_v24  ;;  %368 = vmatpush.msra.mxu2 %v351_v26  ;;  %v308_v48 = vld [vmem:[#allocation10 + $0x90] sm:$0xff]  ;;  %v269_v51 = vld [vmem:[#allocation10 + $0x8] sm:$0xff]  ;;  %v344_v54 = vld [vmem:[#allocation10 + $0x100] sm:$0xff] }
  0x3a   :  { %292 = vmatpush.msra.mxu0 %v275_v27  ;;  %403 = vmatpush.msra.mxu3 %v392_v41  ;;  %v307_v52 = vld [vmem:[#allocation10 + $0x88] sm:$0xff]  ;;  %v511_v55 = vld [vmem:[#allocation10 + $0x378] sm:$0xff]  ;;  %v268_v56 = vld [vmem:[#allocation10] sm:$0xff]  ;;  %v188_v41 = vstv %s1019_s18 }
  0x3b   :  { %330 = vmatpush.msra.mxu1 %v313_v28  ;;  %369 = vmatpush.msra.mxu2 %v350_v30  ;;  %v435_v57 = vld [vmem:[#allocation10 + $0x278] sm:$0xff]  ;;  %v510_v58 = vld [vmem:[#allocation10 + $0x370] sm:$0xff]  ;;  %v306_v59 = vld [vmem:[#allocation10 + $0x80] sm:$0xff] }
  0x3c   :  { %293 = vmatpush.msra.mxu0 %v274_v31  ;;  %404 = vmatpush.msra.mxu3 %v391_v45  ;;  %v434_v60 = vld [vmem:[#allocation10 + $0x270] sm:$0xff]  ;;  %v473_v61 = vld [vmem:[#allocation10 + $0x2f8] sm:$0xff]  ;;  %v509_v1 = vld [vmem:[#allocation10 + $0x368] sm:$0xff] }
  0x3d   :  { %331 = vmatpush.msra.mxu1 %v312_v32  ;;  %370 = vmatpush.msra.mxu2 %v349_v34  ;;  %v388_v62 = vld [vmem:[#allocation10 + $0x1b0] sm:$0xff]  ;;  %v433_v2 = vld [vmem:[#allocation10 + $0x268] sm:$0xff]  ;;  %v508_v10 = vld [vmem:[#allocation10 + $0x360] sm:$0xff] }
  0x3e   :  { %294 = vmatpush.msra.mxu0 %v273_v35  ;;  %405 = vmatpush.msra.mxu3 %v390_v49  ;;  %v387_v3 = vld [vmem:[#allocation10 + $0x1a8] sm:$0xff]  ;;  %v472_v5 = vld [vmem:[#allocation10 + $0x2f0] sm:$0xff]  ;;  %v432_v11 = vld [vmem:[#allocation10 + $0x260] sm:$0xff] }
  0x3f   :  { %332 = vmatpush.msra.mxu1 %v311_v36  ;;  %371 = vmatpush.msra.mxu2 %v348_v38  ;;  %v1032_v6 = vld [vmem:[#allocation7] sm:$0x1]  ;;  %v1042_v8 = vld [vmem:[%s1145_s2 + $0x1] sm:$0x1]  ;;  %v1048_v12 = vld [vmem:[%s1145_s2 + $0x2] sm:$0x1] }
  0x40   :  { %295 = vmatpush.msra.mxu0 %v272_v39  ;;  %406 = vmatpush.msra.mxu3 %v389_v53  ;;  %v1037_v7 = vld [vmem:[%s1145_s2] sm:$0x1]  ;;  %v206_v14 = vmul.f32 %v1025_v0, %v1042_v8  ;;  %v386_v18 = vld [vmem:[#allocation10 + $0x1a0] sm:$0xff]  ;;  %v385_v19 = vld [vmem:[#allocation10 + $0x198] sm:$0xff]  ;;  %v210_v20 = vmul.f32 %v1028_v4, %v1048_v12  ;;  %v179_v21 = vmul.f32 %v1056_v16, %v1042_v8 }
  0x41   :  { %333 = vmatpush.msra.mxu1 %v310_v40  ;;  %372 = vmatpush.msra.mxu2 %v347_v42  ;;  %v202_v13 = vmul.f32 %v1022_v63, %v1037_v7  ;;  %v174_v15 = vmul.f32 %v173_v9, %v1037_v7  ;;  %v471_v17 = vld [vmem:[#allocation10 + $0x2e8] sm:$0xff]  ;;  %v507_v24 = vld [vmem:[#allocation10 + $0x358] sm:$0xff]  ;;  %v184_v27 = vmul.f32 %v1065_v22, %v1048_v12  ;;  %v239_v29 = vld [vmem:[#allocation8] sm:$0x1] }
  0x42   :  { %296 = vmatpush.msra.mxu0 %v271_v43  ;;  %407 = vmatpush.msra.mxu3 %v388_v62  ;;  %v1070_v23 = vld [vmem:[%s1147_s4] sm:$0x1]  ;;  %v242_v30 = vld [vmem:[#allocation8 + $0x1] sm:$0x1]  ;;  %v240_v31 = vmul.f32 %v239_v29, %v173_v9  ;;  %v245_v33 = vld [vmem:[#allocation8 + $0x2] sm:$0x1] }
  0x43   :  { %334 = vmatpush.msra.mxu1 %v309_v44  ;;  %373 = vmatpush.msra.mxu2 %v346_v46  ;;  %v203_v25 = vadd.f32 %v202_v13, %v1032_v6  ;;  %v175_v26 = vadd.f32 %v174_v15, %v1032_v6  ;;  %v238_v28 = vld [vmem:[%s1150_s7] sm:$0x1]  ;;  %v243_v32 = vmul.f32 %v242_v30, %v1056_v16  ;;  %v1089_v36 = vld [vmem:[%s1147_s4 + $0x1] sm:$0x1]  ;;  %v431_v37 = vld [vmem:[#allocation10 + $0x258] sm:$0xff] }
  0x44   :  { %297 = vmatpush.msra.mxu0 %v270_v47  ;;  %408 = vmatpush.msra.mxu3 %v387_v3  ;;  %v1083_v34 = vld [vmem:[%s1148_s5] sm:$0x1]  ;;  %v215_v35 = vmul.f32 %v1070_v23, %v173_v9  ;;  %v246_v40 = vmul.f32 %v245_v33, %v1065_v22  ;;  %v1096_v42 = vld [vmem:[%s1147_s4 + $0x2] sm:$0x1]  ;;  %v248_v43 = vld [vmem:[#allocation8 + $0x3] sm:$0x1]  ;;  %v241_v46 = vadd.f32 %v240_v31, %v238_v28  ;;  %v1105_v3 = vstv %s1058_s21 }
  0x45   :  { %335 = vmatpush.msra.mxu1 %v308_v48  ;;  %374 = vmatpush.msra.mxu2 %v345_v50  ;;  %v207_v38 = vadd.f32 %v206_v14, %v203_v25  ;;  %v180_v39 = vadd.f32 %v179_v21, %v175_v26  ;;  %v470_v44 = vld [vmem:[#allocation10 + $0x2e0] sm:$0xff]  ;;  %v384_v45 = vld [vmem:[#allocation10 + $0x190] sm:$0xff]  ;;  %v218_v48 = vmul.f32 %v1089_v36, %v188_v41  ;;  %v469_v53 = vld [vmem:[#allocation10 + $0x2d8] sm:$0xff] }
  0x46   :  { %298 = vmatpush.msra.mxu0 %v269_v51  ;;  %409 = vmatpush.msra.mxu3 %v386_v18  ;;  %v216_v47 = vadd.f32 %v215_v35, %v1083_v34  ;;  %v506_v49 = vld [vmem:[#allocation10 + $0x350] sm:$0xff]  ;;  %v504_v13 = vld [vmem:[#allocation10 + $0x340] sm:$0xff]  ;;  %v503_v26 = vld [vmem:[#allocation10 + $0x338] sm:$0xff]  ;;  %v197_v28 = vmul.f32 %v1105_v3, %v1048_v12 }
  0x47   :  { %336 = vmatpush.msra.mxu1 %v307_v52  ;;  %375 = vmatpush.msra.mxu2 %v344_v54  ;;  %v430_v50 = vld [vmem:[#allocation10 + $0x250] sm:$0xff]  ;;  %v211_v51 = vadd.f32 %v210_v20, %v207_v38  ;;  %v221_v52 = vmul.f32 %v1096_v42, %v1022_v63  ;;  %v383_v54 = vld [vmem:[#allocation10 + $0x188] sm:$0xff]  ;;  %v428_v14 = vld [vmem:[#allocation10 + $0x240] sm:$0xff] }
  0x48   :  { %299 = vmatpush.msra.mxu0 %v268_v56  ;;  %410 = vmatpush.msra.mxu3 %v385_v19  ;;  %v219_v56 = vadd.f32 %v218_v48, %v216_v47  ;;  %v468_v9 = vld [vmem:[#allocation10 + $0x2d0] sm:$0xff]  ;;  %v382_v20 = vld [vmem:[#allocation10 + $0x180] sm:$0xff] }
  0x49   :  { %512 = vmatpush.msrb.mxu2 %v511_v55  ;;  %337 = vmatpush.msra.mxu1 %v306_v59  ;;  %v244_v55 = vadd.f32 %v243_v32, %v241_v46  ;;  %v251_v59 = vld [vmem:[#allocation8 + $0x4] sm:$0x1]  ;;  %v212_v62 = vmax.f32 %v211_v51, 0.0  ;;  %v257_v19 = vld [vmem:[#allocation8 + $0x6] sm:$0x1]  ;;  %v466_v29 = vld [vmem:[#allocation10 + $0x2c0] sm:$0xff]  ;;  %v233_v51 = vmul.f32 %v1089_v36, %v1105_v3 }
  0x4a   :  { %436 = vmatpush.msrb.mxu0 %v435_v57  ;;  %v249_v57 = vmul.f32 %v248_v43, %v188_v41  ;;  %411 = vmatpush.msra.mxu3 %v384_v45  ;;  %v222_v15 = vadd.f32 %v221_v52, %v219_v56  ;;  %v260_v25 = vld [vmem:[#allocation8 + $0x7] sm:$0x1]  ;;  %v258_v32 = vmul.f32 %v257_v19, %v1022_v63  ;;  %v501_v63 = vld [vmem:[#allocation10 + $0x328] sm:$0xff]  ;;  %v554_v46 = vld [vmem:[#allocation11 + $0x78] sm:$0xff] }
  0x4b   :  { %513 = vmatpush.msrb.mxu2 %v510_v58  ;;  %474 = vmatpush.msrb.mxu1 %v473_v61  ;;  %v192_v58 = vstv %s1030_s6  ;;  %v429_v61 = vld [vmem:[#allocation10 + $0x248] sm:$0xff]  ;;  %v502_v33 = vld [vmem:[#allocation10 + $0x330] sm:$0xff]  ;;  %v261_v12 = vmul.f32 %v260_v25, %v1025_v0  ;;  %v500_v47 = vld [vmem:[#allocation10 + $0x320] sm:$0xff] }
  0x4c   :  { %437 = vmatpush.msrb.mxu0 %v434_v60  ;;  %v505_v60 = vld [vmem:[#allocation10 + $0x348] sm:$0xff]  ;;  %412 = vmatpush.msra.mxu3 %v383_v54  ;;  %v252_v18 = vmul.f32 %v251_v59, %v192_v58  ;;  %v426_v35 = vld [vmem:[#allocation10 + $0x230] sm:$0xff]  ;;  %v223_v38 = vmax.f32 %v222_v15, 0.0  ;;  %v226_v43 = vmul.f32 %v1089_v36, %v192_v58  ;;  %v424_v48 = vld [vmem:[#allocation10 + $0x220] sm:$0xff] }
  0x4d   :  { %514 = vmatpush.msrb.mxu2 %v509_v1  ;;  %475 = vmatpush.msrb.mxu1 %v472_v5  ;;  %v185_v1 = vadd.f32 %v184_v27, %v180_v39  ;;  %v254_v5 = vld [vmem:[#allocation8 + $0x5] sm:$0x1]  ;;  %v463_v52 = vld [vmem:[#allocation10 + $0x2a8] sm:$0xff]  ;;  %v462_v59 = vld [vmem:[#allocation10 + $0x2a0] sm:$0xff] }
  0x4e   :  { %438 = vmatpush.msrb.mxu0 %v433_v2  ;;  %v189_v2 = vmul.f32 %v188_v41, %v1037_v7  ;;  %v467_v7 = vld [vmem:[#allocation10 + $0x2c8] sm:$0xff]  ;;  %376 = vmatmul.f32.vlgmr.msra.gmra.mxu2 %v212_v62  ;;  %v464_v45 = vld [vmem:[#allocation10 + $0x2b0] sm:$0xff]  ;;  %v458_v19 = vld [vmem:[#allocation10 + $0x280] sm:$0xff] }
  0x4f   :  { %515 = vmatpush.msrb.mxu2 %v508_v10  ;;  %476 = vmatpush.msrb.mxu1 %v471_v17  ;;  %v247_v10 = vadd.f32 %v246_v40, %v244_v55  ;;  %v186_v27 = vmax.f32 %v185_v1, 0.0  ;;  %v263_v40 = vld [vmem:[#allocation8 + $0x8] sm:$0x1]  ;;  %v228_v55 = vmul.f32 %v1096_v42, %v1025_v0  ;;  %v553_v56 = vld [vmem:[#allocation11 + $0x70] sm:$0xff]  ;;  %v235_v1 = vmul.f32 %v1096_v42, %v1028_v4  ;;  %v420_v42 = vld [vmem:[#allocation10 + $0x200] sm:$0xff] }
  0x50   :  { %439 = vmatpush.msrb.mxu0 %v432_v11  ;;  %v193_v11 = vmul.f32 %v192_v58, %v1042_v8  ;;  %v190_v17 = vadd.f32 %v189_v2, %v1032_v6  ;;  %v427_v8 = vld [vmem:[#allocation10 + $0x238] sm:$0xff]  ;;  %v224_v6 = vmul.f32 %v1070_v23, %v1056_v16  ;;  %413 = vmatpush.msra.mxu3 %v382_v20  ;;  %v498_v36 = vld [vmem:[#allocation10 + $0x310] sm:$0xff] }
  0x51   :  { %516 = vmatpush.msrb.mxu2 %v507_v24  ;;  %477 = vmatpush.msrb.mxu1 %v470_v44  ;;  %v250_v21 = vadd.f32 %v249_v57, %v247_v10  ;;  %v255_v24 = vmul.f32 %v254_v5, %v1105_v3  ;;  %v465_v16 = vld [vmem:[#allocation10 + $0x2b8] sm:$0xff]  ;;  %v425_v44 = vld [vmem:[#allocation10 + $0x228] sm:$0xff]  ;;  %v422_v0 = vld [vmem:[#allocation10 + $0x210] sm:$0xff] }
  0x52   :  { %440 = vmatpush.msrb.mxu0 %v431_v37  ;;  %v194_v30 = vadd.f32 %v193_v11, %v190_v17  ;;  %v231_v37 = vmul.f32 %v1070_v23, %v1065_v22  ;;  %v225_v41 = vadd.f32 %v224_v6, %v1083_v34  ;;  %414 = vmatmul.f32.vlgmr.msra.gmra.mxu3 %v223_v38  ;;  %v499_v57 = vld [vmem:[#allocation10 + $0x318] sm:$0xff]  ;;  %v497_v5 = vld [vmem:[#allocation10 + $0x308] sm:$0xff]  ;;  %v460_v11 = vld [vmem:[#allocation10 + $0x290] sm:$0xff] }
  0x53   :  { %517 = vmatpush.msrb.mxu2 %v506_v49  ;;  %478 = vmatpush.msrb.mxu1 %v469_v53  ;;  %v253_v31 = vadd.f32 %v252_v18, %v250_v21  ;;  %v264_v49 = vmul.f32 %v263_v40, %v1028_v4  ;;  %v423_v58 = vld [vmem:[#allocation10 + $0x218] sm:$0xff]  ;;  %v421_v10 = vld [vmem:[#allocation10 + $0x208] sm:$0xff]  ;;  %v549_v20 = vld [vmem:[#allocation11 + $0x50] sm:$0xff] }
  0x54   :  { %441 = vmatpush.msrb.mxu0 %v430_v50  ;;  %v198_v22 = vadd.f32 %v197_v28, %v194_v30  ;;  %v232_v50 = vadd.f32 %v231_v37, %v1083_v34  ;;  %v227_v54 = vadd.f32 %v226_v43, %v225_v41  ;;  %556 = vmatpush.msrb.mxu3 %v554_v46  ;;  %v461_v2 = vld [vmem:[#allocation10 + $0x298] sm:$0xff]  ;;  %v459_v18 = vld [vmem:[#allocation10 + $0x288] sm:$0xff]  ;;  %v541_v6 = vld [vmem:[#allocation11 + $0x10] sm:$0xff] }
  0x55   :  { %518 = vmatpush.msrb.mxu2 %v505_v60  ;;  %479 = vmatpush.msrb.mxu1 %v468_v9  ;;  %v256_v39 = vadd.f32 %v255_v24, %v253_v31  ;;  %v552_v60 = vld [vmem:[#allocation11 + $0x68] sm:$0xff]  ;;  %v551_v9 = vld [vmem:[#allocation11 + $0x60] sm:$0xff]  ;;  %v550_v4 = vld [vmem:[#allocation11 + $0x58] sm:$0xff] }
  0x56   :  { %442 = vmatpush.msrb.mxu0 %v429_v61  ;;  %v199_v34 = vmax.f32 %v198_v22, 0.0  ;;  %v234_v62 = vadd.f32 %v233_v51, %v232_v50  ;;  %557 = vmatpush.msrb.mxu3 %v553_v56  ;;  %v229_v3 = vadd.f32 %v228_v55, %v227_v54  ;;  %v548_v21 = vld [vmem:[#allocation11 + $0x48] sm:$0xff]  ;;  %v547_v24 = vld [vmem:[#allocation11 + $0x40] sm:$0xff]  ;;  %v546_v25 = vld [vmem:[#allocation11 + $0x38] sm:$0xff] }
  0x57   :  { %519 = vmatpush.msrb.mxu2 %v504_v13  ;;  %480 = vmatpush.msrb.mxu1 %v467_v7  ;;  %v259_v23 = vadd.f32 %v258_v32, %v256_v39  ;;  %v496_v13 = vld [vmem:[#allocation10 + $0x300] sm:$0xff]  ;;  %v542_v28 = vld [vmem:[#allocation11 + $0x18] sm:$0xff]  ;;  %v596_v32 = vld [vmem:[#allocation13 + $0x70] sm:$0xff] }
  0x58   :  { %443 = vmatpush.msrb.mxu0 %v428_v14  ;;  %558 = vmatpush.msrb.mxu3 %v552_v60  ;;  %v236_v15 = vadd.f32 %v235_v1, %v234_v62  ;;  %v230_v17 = vmax.f32 %v229_v3, 0.0  ;;  %v539_v30 = vld [vmem:[#allocation11] sm:$0xff]  ;;  %v597_v31 = vld [vmem:[#allocation13 + $0x78] sm:$0xff]  ;;  %v267_v37 = vld [vmem:[%s1152_s9] sm:$0x1]  ;;  %s533_s9 = sld [smem:[#allocation5]] }
  0x59   :  { %520 = vmatpush.msrb.mxu2 %v503_v26  ;;  %481 = vmatpush.msrb.mxu1 %v466_v29  ;;  %v262_v53 = vadd.f32 %v261_v12, %v259_v23  ;;  %v545_v26 = vld [vmem:[#allocation11 + $0x30] sm:$0xff]  ;;  %v540_v29 = vld [vmem:[#allocation11 + $0x8] sm:$0xff]  ;;  %v593_v12 = vld [vmem:[#allocation13 + $0x58] sm:$0xff] }
  0x5a   :  { %444 = vmatpush.msrb.mxu0 %v427_v8  ;;  %338 = vmatmul.f32.vlgmr.msra.gmra.mxu1 %v199_v34  ;;  %v237_v7 = vmax.f32 %v236_v15, 0.0  ;;  %v544_v8 = vld [vmem:[#allocation11 + $0x28] sm:$0xff]  ;;  %v589_v22 = vld [vmem:[#allocation13 + $0x38] sm:$0xff]  ;;  %v588_v46 = vld [vmem:[#allocation13 + $0x30] sm:$0xff] }
  0x5b   :  { %300 = vmatmul.f32.vlgmr.msra.gmra.mxu0 %v186_v27  ;;  %521 = vmatpush.msrb.mxu2 %v502_v33  ;;  %v265_v61 = vadd.f32 %v264_v49, %v262_v53  ;;  %v543_v27 = vld [vmem:[#allocation11 + $0x20] sm:$0xff]  ;;  %v595_v33 = vld [vmem:[#allocation13 + $0x68] sm:$0xff]  ;;  %v585_v60 = vld [vmem:[#allocation13 + $0x18] sm:$0xff] }
  0x5c   :  { %445 = vmatpush.msrb.mxu0 %v426_v35  ;;  %482 = vmatpush.msrb.mxu1 %v465_v16  ;;  %v594_v35 = vld [vmem:[#allocation13 + $0x60] sm:$0xff]  ;;  %v592_v16 = vld [vmem:[#allocation13 + $0x50] sm:$0xff]  ;;  %v591_v40 = vld [vmem:[#allocation13 + $0x48] sm:$0xff] }
  0x5d   :  { %522 = vmatpush.msrb.mxu2 %v501_v63  ;;  %v266_v14 = vmax.f32 %v265_v61, 0.0  ;;  %559 = vmatpush.msrb.mxu3 %v551_v9  ;;  %v590_v63 = vld [vmem:[#allocation13 + $0x40] sm:$0xff]  ;;  %v587_v49 = vld [vmem:[#allocation13 + $0x28] sm:$0xff]  ;;  %v640_v1 = vld [vmem:[#allocation14 + $0x78] sm:$0xff] }
  0x5e   :  { %446 = vmatpush.msrb.mxu0 %v425_v44  ;;  %483 = vmatpush.msrb.mxu1 %v464_v45  ;;  %v536_v55 = vstv %s533_s9  ;;  %v586_v34 = vld [vmem:[#allocation13 + $0x20] sm:$0xff]  ;;  %v583_v61 = vld [vmem:[#allocation13 + $0x8] sm:$0xff]  ;;  %v635_v9 = vld [vmem:[#allocation14 + $0x50] sm:$0xff] }
  0x5f   :  { %523 = vmatpush.msrb.mxu2 %v500_v47  ;;  %560 = vmatpush.msrb.mxu3 %v550_v4  ;;  %v582_v62 = vld [vmem:[#allocation13] sm:$0xff]  ;;  %v630_v15 = vld [vmem:[#allocation14 + $0x28] sm:$0xff] }
  0x60   :  { %447 = vmatpush.msrb.mxu0 %v424_v48  ;;  %484 = vmatpush.msrb.mxu1 %v463_v52  ;;  %v637_v3 = vld [vmem:[#allocation14 + $0x60] sm:$0xff]  ;;  %v555_v4 = vld [vmem:[%s1154_s11] sm:$0x1]  ;;  %s682_s11 = sld [smem:[#allocation5 + $0x2]] }
  0x61   :  { %524 = vmatpush.msrb.mxu2 %v499_v57  ;;  %561 = vmatpush.msrb.mxu3 %v549_v20 }
  0x62   :  { %448 = vmatpush.msrb.mxu0 %v423_v58  ;;  %485 = vmatpush.msrb.mxu1 %v462_v59 }
  0x63   :  { %525 = vmatpush.msrb.mxu2 %v498_v36  ;;  %562 = vmatpush.msrb.mxu3 %v548_v21  ;;  %v584_v36 = vld [vmem:[#allocation13 + $0x10] sm:$0xff] }
  0x64   :  { %449 = vmatpush.msrb.mxu0 %v422_v0  ;;  %486 = vmatpush.msrb.mxu1 %v461_v2  ;;  %v639_v0 = vld [vmem:[#allocation14 + $0x70] sm:$0xff]  ;;  %v638_v2 = vld [vmem:[#allocation14 + $0x68] sm:$0xff] }
  0x65   :  { %526 = vmatpush.msrb.mxu2 %v497_v5  ;;  %563 = vmatpush.msrb.mxu3 %v547_v24  ;;  %v636_v5 = vld [vmem:[#allocation14 + $0x58] sm:$0xff]  ;;  %v629_v24 = vld [vmem:[#allocation14 + $0x20] sm:$0xff] }
  0x66   :  { %450 = vmatpush.msrb.mxu0 %v421_v10  ;;  %487 = vmatpush.msrb.mxu1 %v460_v11  ;;  %v634_v10 = vld [vmem:[#allocation14 + $0x48] sm:$0xff]  ;;  %v633_v11 = vld [vmem:[#allocation14 + $0x40] sm:$0xff] }
  0x67   :  { %527 = vmatpush.msrb.mxu2 %v496_v13  ;;  %564 = vmatpush.msrb.mxu3 %v546_v25  ;;  %v632_v13 = vld [vmem:[#allocation14 + $0x38] sm:$0xff] }
  0x68   :  { %528 = vmatmul.f32.vlgmr.msrb.gmra.mxu2 %v266_v14  ;;  %451 = vmatpush.msrb.mxu0 %v420_v42  ;;  %v631_v14 = vld [vmem:[#allocation14 + $0x30] sm:$0xff]  ;;  %v628_v25 = vld [vmem:[#allocation14 + $0x18] sm:$0xff] }
  0x69   :  { %488 = vmatpush.msrb.mxu1 %v459_v18  ;;  %452 = vmatmul.f32.vlgmr.msrb.gmra.mxu0 %v230_v17  ;;  %v579_v18 = vstv %s681_s29 }
  0x6a   :  { %565 = vmatpush.msrb.mxu3 %v545_v26  ;;  %599 = vmatpush.msra.mxu0 %v597_v31  ;;  %v627_v26 = vld [vmem:[#allocation14 + $0x10] sm:$0xff] }
  0x6b   :  { %489 = vmatpush.msrb.mxu1 %v458_v19 }
  0x6c   :  { %490 = vmatmul.f32.vlgmr.msrb.gmra.mxu1 %v237_v7  ;;  %566 = vmatpush.msrb.mxu3 %v544_v8  ;;  %v626_v8 = vld [vmem:[#allocation14 + $0x8] sm:$0xff] }
  0x6d   :  { %600 = vmatpush.msra.mxu0 %v596_v32  ;;  %642 = vmatpush.msra.mxu1 %v640_v1 }
  0x6e   :  { %567 = vmatpush.msrb.mxu3 %v543_v27  ;;  %v625_v27 = vld [vmem:[#allocation14] sm:$0xff] }
  0x6f   :  { %601 = vmatpush.msra.mxu0 %v595_v33  ;;  %643 = vmatpush.msra.mxu1 %v639_v0 }
  0x70   :  { %568 = vmatpush.msrb.mxu3 %v542_v28  ;;  %v598_v28 = vld [vmem:[%s1156_s13] sm:$0x1] }
  0x71   :  { %602 = vmatpush.msra.mxu0 %v594_v35  ;;  %644 = vmatpush.msra.mxu1 %v638_v2 }
  0x72   :  { %569 = vmatpush.msrb.mxu3 %v541_v6 }
  0x73   :  { %603 = vmatpush.msra.mxu0 %v593_v12  ;;  %645 = vmatpush.msra.mxu1 %v637_v3 }
  0x74   :  { %570 = vmatpush.msrb.mxu3 %v540_v29 }
  0x75   :  { %604 = vmatpush.msra.mxu0 %v592_v16  ;;  %646 = vmatpush.msra.mxu1 %v636_v5 }
  0x76   :  { %571 = vmatpush.msrb.mxu3 %v539_v30  ;;  %v622_v30 = vstv %s682_s11 }
  0x77   :  { %605 = vmatpush.msra.mxu0 %v591_v40  ;;  %647 = vmatpush.msra.mxu1 %v635_v9 }
  0x79   :  { %606 = vmatpush.msra.mxu0 %v590_v63  ;;  %648 = vmatpush.msra.mxu1 %v634_v10 }
  0x7b   :  { %607 = vmatpush.msra.mxu0 %v589_v22  ;;  %649 = vmatpush.msra.mxu1 %v633_v11 }
  0x7d   :  { %608 = vmatpush.msra.mxu0 %v588_v46  ;;  %650 = vmatpush.msra.mxu1 %v632_v13 }
  0x7f   :  { %609 = vmatpush.msra.mxu0 %v587_v49  ;;  %651 = vmatpush.msra.mxu1 %v631_v14 }
  0x81   :  { %610 = vmatpush.msra.mxu0 %v586_v34  ;;  %652 = vmatpush.msra.mxu1 %v630_v15 }
  0x83   :  { %611 = vmatpush.msra.mxu0 %v585_v60  ;;  %653 = vmatpush.msra.mxu1 %v629_v24 }
  0x85   :  { %612 = vmatpush.msra.mxu0 %v584_v36  ;;  %654 = vmatpush.msra.mxu1 %v628_v25 }
  0x87   :  { %613 = vmatpush.msra.mxu0 %v583_v61  ;;  %655 = vmatpush.msra.mxu1 %v627_v26 }
  0x89   :  { %614 = vmatpush.msra.mxu0 %v582_v62  ;;  %656 = vmatpush.msra.mxu1 %v626_v8 }
  0x8b   :  { %657 = vmatpush.msra.mxu1 %v625_v27 }
  0xd1   :  { %v377_v43 = vpop.f32.mrf.mxu2 }
  0xd5   :  { %v415_v45 = vpop.f32.mrf.mxu3 }
  0xd7   :  { %v339_v41 = vpop.f32.mrf.mxu1 }
  0xd8   :  { %v301_v38 = vpop.f32.mrf.mxu0 }
  0xd9   :  { %v304_v39 = vadd.f32 %v301_v38, %v267_v37  ;;  %v641_v37 = vld [vmem:[%s1158_s15] sm:$0x1] }
  0xdb   :  { %v342_v44 = vadd.f32 %v339_v41, %v304_v39 }
  0xdd   :  { %v380_v23 = vadd.f32 %v377_v43, %v342_v44 }
  0xdf   :  { %v418_v47 = vadd.f32 %v415_v45, %v380_v23 }
  0xe6   :  { %v453_v48 = vpop.f32.mrf.mxu0 }
  0xe7   :  { %v456_v50 = vadd.f32 %v453_v48, %v418_v47 }
  0xe9   :  { %v491_v51 = vpop.f32.mrf.mxu1 }
  0xea   :  { %v494_v52 = vadd.f32 %v491_v51, %v456_v50 }
  0xeb   :  { %v529_v53 = vpop.f32.mrf.mxu2 }
  0xec   :  { %v532_v54 = vadd.f32 %v529_v53, %v494_v52 }
  0xee   :  { %v535_v56 = vmin.f32 %v532_v54, 0.0  ;;  %v534_v57 = vmax.f32 %v532_v54, 0.0 }
  0xf0   :  { %v537_v58 = vmul.f32 %v536_v55, %v535_v56 }
  0xf2   :  { %v538_v59 = vadd.f32 %v537_v58, %v534_v57 }
  0xf4   :  { %572 = vmatmul.f32.vlgmr.msrb.gmra.mxu3 %v538_v59 }
 0x177   :  { %v573_v42 = vpop.f32.mrf.mxu3 }
 0x178   :  { %v574_v17 = vadd.f32 %v573_v42, %v555_v4 }
 0x17a   :  { %v578_v19 = vmin.f32 %v574_v17, 0.0  ;;  %v577_v7 = vmax.f32 %v574_v17, 0.0 }
 0x17c   :  { %v580_v20 = vmul.f32 %v579_v18, %v578_v19 }
 0x17e   :  { %v581_v21 = vadd.f32 %v580_v20, %v577_v7 }
 0x180   :  { %615 = vmatmul.f32.vlgmr.msra.gmra.mxu0 %v581_v21 }
 0x1fd   :  { %v616_v6 = vpop.f32.mrf.mxu0 }
 0x1fe   :  { %v617_v29 = vadd.f32 %v616_v6, %v598_v28 }
 0x200   :  { %v621_v31 = vmin.f32 %v617_v29, 0.0  ;;  %v620_v32 = vmax.f32 %v617_v29, 0.0 }
 0x202   :  { %v623_v33 = vmul.f32 %v622_v30, %v621_v31 }
 0x204   :  { %v624_v35 = vadd.f32 %v623_v33, %v620_v32 }
 0x206   :  { %658 = vmatmul.f32.vlgmr.msra.gmra.mxu1 %v624_v35 }
 0x283   :  { %v659_v38 = vpop.f32.mrf.mxu1 }
 0x284   :  { %v660_v12 = vadd.f32 %v659_v38, %v641_v37 }
 0x286   :  { %662 = vst [vmem:[%s1159_s16] sm:$0x1] %v660_v12 }
 0x287   :  { %667 = vsyncpa [#allocation3], 1 }
 0x288   :  { %668 = vsyncpa [#allocation9], 1 }
 0x289   :  { %669 = vsyncpa [#allocation12], 1 }
 0x28a   :  { %670 = vsyncpa [#allocation15], 1 }
 0x28b   :  { %671 = vsyncpa [#allocation4], 1 }
 0x28c   :  { %672 = vsyncpa [#allocation6], 1 }

</bundles_post_ra>
